<compile_context>
chip_gen: v5e
topology: v5e:2x2
jax: 0.10.0
libtpu: 0.0.40
codegen_flags: <defaults>
</compile_context>

<pallas_src>
import jax
import jax.numpy as jnp
from jax.experimental import pallas as pl
from jax.experimental.pallas import tpu as pltpu


def _round_up(x, m):
    return ((x + m - 1) // m) * m


def _pick_tm(n_rows, block_rows):
    """Batch tile: multiple of 8, <= block_rows, >=2 grid steps when possible."""
    n_pad8 = _round_up(max(n_rows, 1), 8)
    tm = min(_round_up(block_rows, 8), n_pad8)
    # Ensure >=2 grid steps so the "parallel" batch axis can shard across the
    # two TensorCores on v7x (near-zero impact on single-TC v5e/v6e).
    if n_pad8 > 8 and pl.cdiv(n_pad8, tm) < 2:
        tm = _round_up(pl.cdiv(n_pad8, 2), 8)
    return tm, n_pad8


def _mlp_kernel(x_ref, w1_ref, b1_ref, w2_ref, b2_ref, o_ref):
    # One (tm, n_feature) tile of the batch per grid step; whole MLP fused.
    #   hidden = relu(x @ W1 + b1): bf16 MXU matmul, f32 accumulate,
    #                               bias + ReLU on the f32 VPU path.
    h = jnp.dot(x_ref[...], w1_ref[...], preferred_element_type=jnp.float32)
    h = jnp.maximum(h + b1_ref[...], 0.0)
    #   out = hidden @ W2 + b2: W2 is tiny (n_hidden x n_output), so upcasting
    #   it to f32 is free and keeps the second matmul in full precision.
    y = jnp.dot(h, w2_ref[...].astype(jnp.float32),
                preferred_element_type=jnp.float32)
    o_ref[...] = (y + b2_ref[...]).astype(o_ref.dtype)   # contiguous lane store


def net_forward(x, w1, b1, w2, b2, *, block_rows=2048):
    """Forward pass of Net as a single fused, batch-gridded Pallas kernel.

    x  : (N, n_feature)
    w1 : (n_feature, n_hidden),  b1 : (1, n_hidden)
    w2 : (n_hidden, n_output),   b2 : (1, n_output)
    returns (N, n_output) float32
    """
    n, n_feature = x.shape
    n_hidden = w1.shape[1]
    n_output = w2.shape[1]

    tm, n_pad8 = _pick_tm(n, block_rows)

    # bf16 operands for the HBM-bound x read.  These casts are no-ops if the
    # caller already stores data in bf16 (recommended in a real pipeline so
    # the wrapper does not add an extra HBM pass).  Biases stay f32 (tiny).
    xq = x.astype(jnp.bfloat16)
    w1q = w1.astype(jnp.bfloat16)
    w2q = w2.astype(jnp.bfloat16)
    b1f = b1.astype(jnp.float32)
    b2f = b2.astype(jnp.float32)

    # Only the batch axis is ever padded, and only by up to 7 rows.
    if n_pad8 != n:
        xq = jnp.pad(xq, ((0, n_pad8 - n), (0, 0)))

    grid = (pl.cdiv(n_pad8, tm),)

    # Cost estimate from the real (unpadded-feature) shapes.
    flops = 2 * n_pad8 * (n_feature * n_hidden + n_hidden * n_output)
    bytes_accessed = (
        n_pad8 * n_feature * 2                       # x read (bf16)
        + n_feature * n_hidden * 2 + n_hidden * 4    # W1 (bf16) + b1 (f32)
        + n_hidden * n_output * 2 + n_output * 4     # W2 (bf16) + b2 (f32)
        + n_pad8 * n_output * 4                      # out write (f32)
    )

    out = pl.pallas_call(
        _mlp_kernel,
        out_shape=jax.ShapeDtypeStruct((n_pad8, n_output), jnp.float32),
        grid=grid,
        in_specs=[
            pl.BlockSpec((tm, n_feature), lambda i: (i, 0)),      # x: streamed
            pl.BlockSpec((n_feature, n_hidden), lambda i: (0, 0)),  # W1: resident
            pl.BlockSpec((1, n_hidden), lambda i: (0, 0)),          # b1: resident
            pl.BlockSpec((n_hidden, n_output), lambda i: (0, 0)),   # W2: resident
            pl.BlockSpec((1, n_output), lambda i: (0, 0)),          # b2: resident
        ],
        out_specs=pl.BlockSpec((tm, n_output), lambda i: (i, 0)),
        compiler_params=pltpu.CompilerParams(
            dimension_semantics=("parallel",),        # v7x megacore sharding
        ),
        cost_estimate=pl.CostEstimate(
            flops=flops, transcendentals=0, bytes_accessed=bytes_accessed
        ),
    )(xq, w1q, b1f, w2q, b2f)

    return out[:n] if n_pad8 != n else out


def init_params(key, n_feature, n_hidden, n_output):
    """Deterministic init mimicking torch.nn.Linear (uniform +/- 1/sqrt(fan_in))."""
    k1, k2, k3, k4 = jax.random.split(key, 4)
    lim1 = 1.0 / jnp.sqrt(jnp.float32(n_feature))
    lim2 = 1.0 / jnp.sqrt(jnp.float32(n_hidden))
    w1 = jax.random.uniform(k1, (n_feature, n_hidden), jnp.float32, -lim1, lim1)
    b1 = jax.random.uniform(k2, (1, n_hidden), jnp.float32, -lim1, lim1)
    w2 = jax.random.uniform(k3, (n_hidden, n_output), jnp.float32, -lim2, lim2)
    b2 = jax.random.uniform(k4, (1, n_output), jnp.float32, -lim2, lim2)
    return w1, b1, w2, b2


if __name__ == "__main__":
    # Shapes implied by Classification.py: Net(n_feature=2, n_hidden=10,
    # n_output=2) on a batch of 2-D points.  batch=16 so the grid has 2
    # parallel steps (exercises the v7x megacore path).
    n_feature, n_hidden, n_output = 2, 10, 2
    batch = 16

    key = jax.random.PRNGKey(0)
    kx0, kx1, kp = jax.random.split(key, 3)

    # synthetic 2-class blob data, analogous to torch.normal(+/-2, 1)
    x0 = 2.0 + jax.random.normal(kx0, (batch // 2, n_feature), jnp.float32)
    x1 = -2.0 + jax.random.normal(kx1, (batch // 2, n_feature), jnp.float32)
    x = jnp.concatenate([x0, x1], axis=0)             # (16, 2) float32

    w1, b1, w2, b2 = init_params(kp, n_feature, n_hidden, n_output)

    out = net_forward(x, w1, b1, w2, b2)
    jax.block_until_ready(out)

    # Reference in plain f32 JAX on the same bf16-quantized operands the
    # kernel consumes (remaining delta is just accumulation order/precision).
    xq = x.astype(jnp.bfloat16).astype(jnp.float32)
    w1q = w1.astype(jnp.bfloat16).astype(jnp.float32)
    w2q = w2.astype(jnp.bfloat16).astype(jnp.float32)
    ref = jnp.maximum(xq @ w1q + b1, 0.0) @ w2q + b2

    assert out.shape == (batch, n_output)
    assert jnp.allclose(out, ref, atol=1e-3, rtol=1e-3), "mismatch vs. reference"

    print("KERNEL_OK")
</pallas_src>

<mosaic_0001>
module attributes {stable_mosaic.version = 11 : i64} {
  func.func @_mlp_kernel(%arg0: i32, %arg1: memref<8x2xbf16, #tpu.memory_space<vmem>>, %arg2: memref<2x10xbf16, #tpu.memory_space<vmem>>, %arg3: memref<1x10xf32, #tpu.memory_space<vmem>>, %arg4: memref<10x2xbf16, #tpu.memory_space<vmem>>, %arg5: memref<1x2xf32, #tpu.memory_space<vmem>>, %arg6: memref<8x2xf32, #tpu.memory_space<vmem>>) attributes {dimension_semantics = [#tpu.dimension_semantics<parallel>], iteration_bounds = array<i64: 2>, scalar_prefetch = 0 : i64, scratch_operands = 0 : i64, tpu.core_type = #tpu.core_type<tc>, window_params = [{transform_indices = @transform_0, window_bounds = array<i64: 8, 2>}, {pipeline_mode = #tpu.pipeline_mode<synchronous>, transform_indices = @transform_1, window_bounds = array<i64: 2, 10>}, {pipeline_mode = #tpu.pipeline_mode<synchronous>, transform_indices = @transform_2, window_bounds = array<i64: 1, 10>}, {pipeline_mode = #tpu.pipeline_mode<synchronous>, transform_indices = @transform_3, window_bounds = array<i64: 10, 2>}, {pipeline_mode = #tpu.pipeline_mode<synchronous>, transform_indices = @transform_4, window_bounds = array<i64: 1, 2>}, {transform_indices = @transform_5, window_bounds = array<i64: 8, 2>}]} {
    %c0 = arith.constant 0 : index
    %c0_0 = arith.constant 0 : index
    %0 = vector.load %arg1[%c0, %c0_0] : memref<8x2xbf16, #tpu.memory_space<vmem>>, vector<8x2xbf16>
    %c0_1 = arith.constant 0 : index
    %c0_2 = arith.constant 0 : index
    %1 = vector.load %arg2[%c0_1, %c0_2] : memref<2x10xbf16, #tpu.memory_space<vmem>>, vector<2x10xbf16>
    %cst = arith.constant dense<0.000000e+00> : vector<8x10xf32>
    %2 = tpu.matmul %0, %1, %cst {dimension_numbers = #tpu.dot_dimension_numbers<[1], [0], [0], [1], [0, 0, 1, 1], [], []>} : vector<8x2xbf16>, vector<2x10xbf16>, vector<8x10xf32> -> vector<8x10xf32>
    %c0_3 = arith.constant 0 : index
    %c0_4 = arith.constant 0 : index
    %3 = vector.load %arg3[%c0_3, %c0_4] : memref<1x10xf32, #tpu.memory_space<vmem>>, vector<1x10xf32>
    %4 = vector.broadcast %3 : vector<1x10xf32> to vector<8x10xf32>
    %5 = arith.addf %2, %4 : vector<8x10xf32>
    %cst_5 = arith.constant 0.000000e+00 : f32
    %6 = vector.broadcast %cst_5 : f32 to vector<8x10xf32>
    %7 = arith.maximumf %5, %6 : vector<8x10xf32>
    %c0_6 = arith.constant 0 : index
    %c0_7 = arith.constant 0 : index
    %8 = vector.load %arg4[%c0_6, %c0_7] : memref<10x2xbf16, #tpu.memory_space<vmem>>, vector<10x2xbf16>
    %9 = arith.extf %8 : vector<10x2xbf16> to vector<10x2xf32>
    %cst_8 = arith.constant dense<0.000000e+00> : vector<8x2xf32>
    %10 = tpu.matmul %7, %9, %cst_8 {dimension_numbers = #tpu.dot_dimension_numbers<[1], [0], [0], [1], [0, 0, 1, 1], [], []>} : vector<8x10xf32>, vector<10x2xf32>, vector<8x2xf32> -> vector<8x2xf32>
    %c0_9 = arith.constant 0 : index
    %c0_10 = arith.constant 0 : index
    %11 = vector.load %arg5[%c0_9, %c0_10] : memref<1x2xf32, #tpu.memory_space<vmem>>, vector<1x2xf32>
    %12 = vector.broadcast %11 : vector<1x2xf32> to vector<8x2xf32>
    %13 = arith.addf %10, %12 : vector<8x2xf32>
    %c0_11 = arith.constant 0 : index
    %c0_12 = arith.constant 0 : index
    %14 = vector.load %arg6[%c0_11, %c0_12] : memref<8x2xf32, #tpu.memory_space<vmem>>, vector<8x2xf32>
    tpu.vector_store %arg6[%c0_11, %c0_12], %13 {strides = array<i32>} : memref<8x2xf32, #tpu.memory_space<vmem>>, vector<8x2xf32>,
    return
  }
  func.func @transform_0(%arg0: i32) -> (i32, i32) {
    %c0_i32 = arith.constant 0 : i32
    %c0_i32_0 = arith.constant 0 : i32
    return %arg0, %c0_i32 : i32, i32
  }
  func.func @transform_1(%arg0: i32) -> (i32, i32) {
    %c0_i32 = arith.constant 0 : i32
    %c0_i32_0 = arith.constant 0 : i32
    %c0_i32_1 = arith.constant 0 : i32
    return %c0_i32, %c0_i32_0 : i32, i32
  }
  func.func @transform_2(%arg0: i32) -> (i32, i32) {
    %c0_i32 = arith.constant 0 : i32
    %c0_i32_0 = arith.constant 0 : i32
    %c0_i32_1 = arith.constant 0 : i32
    return %c0_i32, %c0_i32_0 : i32, i32
  }
  func.func @transform_3(%arg0: i32) -> (i32, i32) {
    %c0_i32 = arith.constant 0 : i32
    %c0_i32_0 = arith.constant 0 : i32
    %c0_i32_1 = arith.constant 0 : i32
    return %c0_i32, %c0_i32_0 : i32, i32
  }
  func.func @transform_4(%arg0: i32) -> (i32, i32) {
    %c0_i32 = arith.constant 0 : i32
    %c0_i32_0 = arith.constant 0 : i32
    %c0_i32_1 = arith.constant 0 : i32
    return %c0_i32, %c0_i32_0 : i32, i32
  }
  func.func @transform_5(%arg0: i32) -> (i32, i32) {
    %c0_i32 = arith.constant 0 : i32
    %c0_i32_0 = arith.constant 0 : i32
    return %arg0, %c0_i32 : i32, i32
  }
}

</mosaic_0001>

<bundles_post_ra>
// kernel: tpu_custom_call.1
= control target key start
LH: loop header
LB: loop body
LE: loop exit
PB: predicated region body
PF: predicated region fallthrough
CT: control target
= control target key end

     0   :  { %s399_s18 = smov 0   ;;  %s433_s0 = inlined_call_operand.vmem [shape: bf16[16,2], index: 0, kind: input, shape index: {}]   ;;  %s434_s1 = inlined_call_operand.vmem [shape: bf16[2,10], index: 1, kind: input, shape index: {}]   ;;  %s435_s2 = inlined_call_operand.vmem [shape: f32[1,10], index: 2, kind: input, shape index: {}]   ;;  %s436_s3 = inlined_call_operand.vmem [shape: bf16[10,2], index: 3, kind: input, shape index: {}]   ;;  %s437_s4 = inlined_call_operand.vmem [shape: f32[1,2], index: 4, kind: input, shape index: {}]   ;;  %s438_s5 = inlined_call_operand.vmem [shape: f32[16,2], index: 5, kind: output, shape index: {}]  }
   0x1 LB: > { %s339_s19 = sadd.s32 4294967295, %s367_s18   ;;  %p343_p0 = scmp.ge.s32.totalorder %s367_s18, 1  ;;  %s367_s18 = sphi %s399_s18, %s15_s18  }
   0x2   : > { %p186_p1 = scmp.lt.s32.totalorder %s367_s18, 3 }
   0x4   : > { %p187_p2 = pnand %p343_p0, %p186_p1 }
   0x5   : > { %p212_p3 = scmp.lt.s32.totalorder (!%p187_p2), %s339_s19, 1 }
   0x6   : > { %190 = sbr.rel (%p187_p2) target bundleno = 275 (0x113), region = 40 }
   0xb   : > { %v222_v0 = vld [vmem:[%s434_s1] sm:$0x1]  ;;  %vm231_vm0 = vcmask 1040384   ;;  %s440_s19 = smov (!%p212_p3, %s339_s19), 1  ;;  %vm227_vm1 = vcmask 15360   ;;  %vm261_vm2 = vcmask 1041408  }
   0xc   : > { %v233_v1 = vsel %vm231_vm0, %v222_v0, 0  ;;  %s344_s22 = sshll.u32 %s440_s19, 2  ;;  %v250_v3 = vld [vmem:[%s436_s3 + $0x4] sm:$0x1]  ;;  %v249_v5 = vld [vmem:[%s436_s3] sm:$0xf] }
   0xd   : > { %242 = vmatpush.bf16.msra.mxu0 %v233_v1  ;;  %s215_s25 = scalar_lea.vmem %s433_s0, %s344_s22  ;;  %v252_v4 = vunpack.c.l.bf16 %v250_v3  ;;  %v251_v6 = vunpack.c.l.bf16 %v249_v5  ;;  %v359_v7 = vld [vmem:[%s435_s2] ss:$0 sm:$0xff]  ;;  %vm257_vm3 = vcmask 80896   ;;  %s345_s7 = sshll.u32 %s440_s19, 3 }
   0xe   : > { %v221_v2 = vld [vmem:[%s215_s25] sm:$0xf]  ;;  %s219_s12 = scalar_lea.vmem %s438_s5, %s345_s7 }
   0xf   : > { %347 = vmatpush.msk.msra.mxu1 %vm261_vm2, %v252_v4  ;;  %v360_v12 = vld [vmem:[%s437_s4] ss:$0 sm:$0xff] }
  0x10   : > { %346 = vmatmul.msk.bf16.vlgmr.msra.gmra.mxu0 %vm227_vm1, %v221_v2 }
  0x11   : > { %280 = vmatpush.msra.mxu1 %v251_v6 }
  0x8d   : > { %v244_v8 = vpop.f32.mrf.mxu0 }
  0x8e   : > { %v245_v9 = vadd.f32 %v359_v7, %v244_v8 }
  0x90   : > { %v248_v10 = vmax.f32 %v245_v9, 0.0 }
  0x92   : > { %348 = vmatmul.msk.f32.vlgmr.msra.gmra.mxu1 %vm257_vm3, %v248_v10 }
  0x95   : > { %v246_v11 = vpop.f32.mrf.mxu0 }
 0x10f   : > { %v282_v13 = vpop.f32.mrf.mxu1 }
 0x110   : > { %v283_v14 = vadd.f32 %v360_v12, %v282_v13 }
 0x112   : > { %285 = vst.msk [vmem:[%s219_s12] sm:$0xff] %vm227_vm1, %v283_v14 }
 0x113 PF: > { %s15_s18 = sadd.s32 1, %s367_s18  }
 0x114   : > { %p12_p4 = scmp.ge.s32.totalorder %s15_s18, 4  }
 0x116   :  { %14 = sbr.rel (!%p12_p4) target bundleno = 1 (0x1), region = 70 }

</bundles_post_ra>
